<compile_context>
chip_gen: v6e
topology: v6e:2x2x1
jax: 0.10.0
libtpu: 0.0.40
codegen_flags: <defaults>
</compile_context>

<pallas_src>
import functools

import jax
import jax.numpy as jnp
from jax.experimental import pallas as pl
from jax.experimental.pallas import tpu as pltpu


def _round_up(n, m):
    return ((n + m - 1) // m) * m


def _mlp_kernel(*refs, n_layers):
    # refs: x_ref, (w0, b0), ..., (w{L-1}, b{L-1}), o_ref
    x_ref = refs[0]
    o_ref = refs[1 + 2 * n_layers]
    h = x_ref[...]                                     # (tm, d_in) bf16
    for i in range(n_layers):
        w_ref = refs[1 + 2 * i]                        # (d_i, d_{i+1}) bf16
        b_ref = refs[2 + 2 * i]                        # (1, d_{i+1})   f32
        h = jnp.dot(h.astype(jnp.bfloat16), w_ref[...],
                    preferred_element_type=jnp.float32)
        h = h + b_ref[...]                             # f32 bias add (broadcast)
        if i < n_layers - 1:                           # ReLU between layers only
            h = jnp.maximum(h, 0.0)
    o_ref[...] = h.astype(o_ref.dtype)


def _vmem_limit_bytes(x_p, weights, biases, block_m, out_pad):
    def nbytes(a):
        return int(a.size) * a.dtype.itemsize

    resident = sum(nbytes(w) + nbytes(b) for w, b in zip(weights, biases))
    widest = max([x_p.shape[1]] + [w.shape[1] for w in weights])
    per_step = (block_m * x_p.shape[1] * 2      # x tile (bf16)
                + block_m * out_pad * 4         # out tile (f32)
                + 2 * block_m * widest * 4)     # live f32 activations
    est = 2 * resident + 2 * per_step + (2 << 20)
    return int(min(max(est, 32 << 20), 64 << 20))


def fused_mlp(x_p, weights, biases, *, block_m):
    """x_p: (B_pad, d_in) bf16; weights[i]: (d_i, d_{i+1}) bf16; biases[i]: (1, d_{i+1}) f32."""
    n_layers = len(weights)
    B_pad, d_in = x_p.shape
    out_pad = weights[-1].shape[1]
    grid = (B_pad // block_m,)

    operands = [x_p]
    in_specs = [pl.BlockSpec((block_m, d_in), lambda i: (i, 0))]
    for w, b in zip(weights, biases):
        operands += [w, b]
        # Constant block index -> fetched once, stays VMEM-resident across steps.
        in_specs.append(pl.BlockSpec(w.shape, lambda i: (0, 0)))
        in_specs.append(pl.BlockSpec(b.shape, lambda i: (0, 0)))

    kernel = functools.partial(_mlp_kernel, n_layers=n_layers)
    return pl.pallas_call(
        kernel,
        out_shape=jax.ShapeDtypeStruct((B_pad, out_pad), jnp.float32),
        grid_spec=pltpu.PrefetchScalarGridSpec(
            num_scalar_prefetch=0,
            grid=grid,
            in_specs=in_specs,
            out_specs=pl.BlockSpec((block_m, out_pad), lambda i: (i, 0)),
        ),
        compiler_params=pltpu.CompilerParams(
            dimension_semantics=("parallel",),   # shards batch tiles across v7x's 2 TCs
            vmem_limit_bytes=_vmem_limit_bytes(x_p, weights, biases, block_m, out_pad),
        ),
    )(*operands)


@functools.partial(jax.jit, static_argnums=(3,))
def _mlp_forward(x, weights, biases, n_classes):
    B, _ = x.shape
    block_m = min(256, _round_up(max(B, 1), 8))
    B_pad = _round_up(B, block_m)
    # Pad batch only (feature dim stays at its true size); feed activations as bf16.
    x_p = jnp.pad(x, ((0, B_pad - B), (0, 0))).astype(jnp.bfloat16)
    out = fused_mlp(x_p, list(weights), list(biases), block_m=block_m)
    return out[:B, :n_classes]


class MLPPallas:
    """Mirror of the PyTorch MLP: Linear -> (ReLU -> Linear)*."""

    def __init__(self, n_inputs, n_hidden, n_classes, key):
        n_in = [n_inputs] + list(n_hidden)
        n_out = list(n_hidden) + [n_classes]
        self.n_classes = n_classes
        self.out_pad = _round_up(n_classes, 128)   # lane-dense final stores
        weights, biases = [], []
        for li, (fi, fo) in enumerate(zip(n_in, n_out)):
            key, kw, kb = jax.random.split(key, 3)
            # nn.Linear-style init: U(-1/sqrt(fi), 1/sqrt(fi))
            bound = 1.0 / float(fi) ** 0.5
            w = jax.random.uniform(kw, (fo, fi), jnp.float32, -bound, bound)
            b = jax.random.uniform(kb, (fo,), jnp.float32, -bound, bound)
            is_last = li == len(n_out) - 1
            fo_store = self.out_pad if is_last else fo
            # Pre-transpose once at init; zero padding (last layer only) is inert.
            w_t = jnp.zeros((fi, fo_store), jnp.float32).at[:, :fo].set(w.T)
            b_row = jnp.zeros((1, fo_store), jnp.float32).at[0, :fo].set(b)
            # Canonical params of this model: bf16 weights, f32 biases.
            weights.append(w_t.astype(jnp.bfloat16))
            biases.append(b_row)
        self.weights = tuple(weights)
        self.biases = tuple(biases)

    def forward(self, x):
        return _mlp_forward(x, self.weights, self.biases, self.n_classes)


def mlp_reference(weights, biases, x, n_classes):
    """Plain-JAX forward with the same (bf16) params / same precision recipe."""
    h = x.astype(jnp.bfloat16)
    for i, (w, b) in enumerate(zip(weights, biases)):
        h = jnp.dot(h.astype(jnp.bfloat16), w,
                    preferred_element_type=jnp.float32) + b
        if i < len(weights) - 1:
            h = jnp.maximum(h, 0.0)
    return h[:, :n_classes]


if __name__ == "__main__":
    key = jax.random.PRNGKey(0)
    n_inputs, n_hidden, n_classes = 32, [64, 48], 16

    key, kparams = jax.random.split(key)
    mlp = MLPPallas(n_inputs, n_hidden, n_classes, kparams)

    # batch=8   -> single small tile (tiny-batch path, grid=(1,))
    # batch=640 -> 256-row tiles, grid=(3,): exercises the pipelined batch grid
    for batch in (8, 640):
        key, kx = jax.random.split(key)
        x = jax.random.normal(kx, (batch, n_inputs), jnp.float32)
        out = jax.block_until_ready(mlp.forward(x))
        ref = mlp_reference(mlp.weights, mlp.biases, x, n_classes)
        assert out.shape == (batch, n_classes)
        assert jnp.allclose(out, ref, atol=1e-4, rtol=1e-4), (
            "max abs err", float(jnp.max(jnp.abs(out - ref))))

    print("KERNEL_OK")
</pallas_src>

<mosaic_0001>
module attributes {stable_mosaic.version = 11 : i64} {
  func.func @_mlp_kernel(%arg0: i32, %arg1: memref<8x32xbf16, #tpu.memory_space<vmem>>, %arg2: memref<32x64xbf16, #tpu.memory_space<vmem>>, %arg3: memref<1x64xf32, #tpu.memory_space<vmem>>, %arg4: memref<64x48xbf16, #tpu.memory_space<vmem>>, %arg5: memref<1x48xf32, #tpu.memory_space<vmem>>, %arg6: memref<48x128xbf16, #tpu.memory_space<vmem>>, %arg7: memref<1x128xf32, #tpu.memory_space<vmem>>, %arg8: memref<8x128xf32, #tpu.memory_space<vmem>>) attributes {dimension_semantics = [#tpu.dimension_semantics<parallel>], iteration_bounds = array<i64: 1>, scalar_prefetch = 0 : i64, scratch_operands = 0 : i64, tpu.core_type = #tpu.core_type<tc>, window_params = [{transform_indices = @transform_0, window_bounds = array<i64: 8, 32>}, {pipeline_mode = #tpu.pipeline_mode<synchronous>, transform_indices = @transform_1, window_bounds = array<i64: 32, 64>}, {pipeline_mode = #tpu.pipeline_mode<synchronous>, transform_indices = @transform_2, window_bounds = array<i64: 1, 64>}, {pipeline_mode = #tpu.pipeline_mode<synchronous>, transform_indices = @transform_3, window_bounds = array<i64: 64, 48>}, {pipeline_mode = #tpu.pipeline_mode<synchronous>, transform_indices = @transform_4, window_bounds = array<i64: 1, 48>}, {pipeline_mode = #tpu.pipeline_mode<synchronous>, transform_indices = @transform_5, window_bounds = array<i64: 48, 128>}, {pipeline_mode = #tpu.pipeline_mode<synchronous>, transform_indices = @transform_6, window_bounds = array<i64: 1, 128>}, {transform_indices = @transform_7, window_bounds = array<i64: 8, 128>}]} {
    %c0 = arith.constant 0 : index
    %c0_0 = arith.constant 0 : index
    %0 = vector.load %arg1[%c0, %c0_0] : memref<8x32xbf16, #tpu.memory_space<vmem>>, vector<8x32xbf16>
    %c0_1 = arith.constant 0 : index
    %c0_2 = arith.constant 0 : index
    %1 = vector.load %arg2[%c0_1, %c0_2] : memref<32x64xbf16, #tpu.memory_space<vmem>>, vector<32x64xbf16>
    %cst = arith.constant dense<0.000000e+00> : vector<8x64xf32>
    %2 = tpu.matmul %0, %1, %cst {dimension_numbers = #tpu.dot_dimension_numbers<[1], [0], [0], [1], [0, 0, 1, 1], [], []>} : vector<8x32xbf16>, vector<32x64xbf16>, vector<8x64xf32> -> vector<8x64xf32>
    %c0_3 = arith.constant 0 : index
    %c0_4 = arith.constant 0 : index
    %3 = vector.load %arg3[%c0_3, %c0_4] : memref<1x64xf32, #tpu.memory_space<vmem>>, vector<1x64xf32>
    %4 = vector.broadcast %3 : vector<1x64xf32> to vector<8x64xf32>
    %5 = arith.addf %2, %4 : vector<8x64xf32>
    %cst_5 = arith.constant 0.000000e+00 : f32
    %6 = vector.broadcast %cst_5 : f32 to vector<8x64xf32>
    %7 = arith.maximumf %5, %6 : vector<8x64xf32>
    %8 = arith.truncf %7 : vector<8x64xf32> to vector<8x64xbf16>
    %c0_6 = arith.constant 0 : index
    %c0_7 = arith.constant 0 : index
    %9 = vector.load %arg4[%c0_6, %c0_7] : memref<64x48xbf16, #tpu.memory_space<vmem>>, vector<64x48xbf16>
    %cst_8 = arith.constant dense<0.000000e+00> : vector<8x48xf32>
    %10 = tpu.matmul %8, %9, %cst_8 {dimension_numbers = #tpu.dot_dimension_numbers<[1], [0], [0], [1], [0, 0, 1, 1], [], []>} : vector<8x64xbf16>, vector<64x48xbf16>, vector<8x48xf32> -> vector<8x48xf32>
    %c0_9 = arith.constant 0 : index
    %c0_10 = arith.constant 0 : index
    %11 = vector.load %arg5[%c0_9, %c0_10] : memref<1x48xf32, #tpu.memory_space<vmem>>, vector<1x48xf32>
    %12 = vector.broadcast %11 : vector<1x48xf32> to vector<8x48xf32>
    %13 = arith.addf %10, %12 : vector<8x48xf32>
    %cst_11 = arith.constant 0.000000e+00 : f32
    %14 = vector.broadcast %cst_11 : f32 to vector<8x48xf32>
    %15 = arith.maximumf %13, %14 : vector<8x48xf32>
    %16 = arith.truncf %15 : vector<8x48xf32> to vector<8x48xbf16>
    %c0_12 = arith.constant 0 : index
    %c0_13 = arith.constant 0 : index
    %17 = vector.load %arg6[%c0_12, %c0_13] : memref<48x128xbf16, #tpu.memory_space<vmem>>, vector<48x128xbf16>
    %cst_14 = arith.constant dense<0.000000e+00> : vector<8x128xf32>
    %18 = tpu.matmul %16, %17, %cst_14 {dimension_numbers = #tpu.dot_dimension_numbers<[1], [0], [0], [1], [0, 0, 1, 1], [], []>} : vector<8x48xbf16>, vector<48x128xbf16>, vector<8x128xf32> -> vector<8x128xf32>
    %c0_15 = arith.constant 0 : index
    %c0_16 = arith.constant 0 : index
    %19 = vector.load %arg7[%c0_15, %c0_16] : memref<1x128xf32, #tpu.memory_space<vmem>>, vector<1x128xf32>
    %20 = vector.broadcast %19 : vector<1x128xf32> to vector<8x128xf32>
    %21 = arith.addf %18, %20 : vector<8x128xf32>
    %c0_17 = arith.constant 0 : index
    %c0_18 = arith.constant 0 : index
    %22 = vector.load %arg8[%c0_17, %c0_18] : memref<8x128xf32, #tpu.memory_space<vmem>>, vector<8x128xf32>
    tpu.vector_store %arg8[%c0_17, %c0_18], %21 {strides = array<i32>} : memref<8x128xf32, #tpu.memory_space<vmem>>, vector<8x128xf32>,
    return
  }
  func.func @transform_0(%arg0: i32) -> (i32, i32) {
    %c0_i32 = arith.constant 0 : i32
    %c0_i32_0 = arith.constant 0 : i32
    return %arg0, %c0_i32 : i32, i32
  }
  func.func @transform_1(%arg0: i32) -> (i32, i32) {
    %c0_i32 = arith.constant 0 : i32
    %c0_i32_0 = arith.constant 0 : i32
    %c0_i32_1 = arith.constant 0 : i32
    return %c0_i32, %c0_i32_0 : i32, i32
  }
  func.func @transform_2(%arg0: i32) -> (i32, i32) {
    %c0_i32 = arith.constant 0 : i32
    %c0_i32_0 = arith.constant 0 : i32
    %c0_i32_1 = arith.constant 0 : i32
    return %c0_i32, %c0_i32_0 : i32, i32
  }
  func.func @transform_3(%arg0: i32) -> (i32, i32) {
    %c0_i32 = arith.constant 0 : i32
    %c0_i32_0 = arith.constant 0 : i32
    %c0_i32_1 = arith.constant 0 : i32
    return %c0_i32, %c0_i32_0 : i32, i32
  }
  func.func @transform_4(%arg0: i32) -> (i32, i32) {
    %c0_i32 = arith.constant 0 : i32
    %c0_i32_0 = arith.constant 0 : i32
    %c0_i32_1 = arith.constant 0 : i32
    return %c0_i32, %c0_i32_0 : i32, i32
  }
  func.func @transform_5(%arg0: i32) -> (i32, i32) {
    %c0_i32 = arith.constant 0 : i32
    %c0_i32_0 = arith.constant 0 : i32
    %c0_i32_1 = arith.constant 0 : i32
    return %c0_i32, %c0_i32_0 : i32, i32
  }
  func.func @transform_6(%arg0: i32) -> (i32, i32) {
    %c0_i32 = arith.constant 0 : i32
    %c0_i32_0 = arith.constant 0 : i32
    %c0_i32_1 = arith.constant 0 : i32
    return %c0_i32, %c0_i32_0 : i32, i32
  }
  func.func @transform_7(%arg0: i32) -> (i32, i32) {
    %c0_i32 = arith.constant 0 : i32
    %c0_i32_0 = arith.constant 0 : i32
    return %arg0, %c0_i32 : i32, i32
  }
}

</mosaic_0001>

<bundles_post_ra>
// kernel: _mlp_forward.1
= control target key start
LH: loop header
LB: loop body
LE: loop exit
PB: predicated region body
PF: predicated region fallthrough
CT: control target
= control target key end

     0   :  { %v364_v1 = vmov 0.0   ;;  %vm365_vm0 = vmmov 0   ;;  %vm52_vm1 = vcmask 261120   ;;  %s452_s0 = inlined_call_operand.vmem [shape: bf16[8,32], index: 0, kind: input, shape index: {}]   ;;  %s453_s1 = inlined_call_operand.vmem [shape: bf16[32,64], index: 1, kind: input, shape index: {}]   ;;  %s454_s2 = inlined_call_operand.vmem [shape: f32[1,64], index: 2, kind: input, shape index: {}]   ;;  %s455_s3 = inlined_call_operand.vmem [shape: bf16[64,48], index: 3, kind: input, shape index: {}]   ;;  %s456_s4 = inlined_call_operand.vmem [shape: f32[1,48], index: 4, kind: input, shape index: {}]   ;;  %s457_s5 = inlined_call_operand.vmem [shape: bf16[48,128], index: 5, kind: input, shape index: {}]   ;;  %s458_s6 = inlined_call_operand.vmem [shape: f32[1,128], index: 6, kind: input, shape index: {}]   ;;  %s459_s7 = inlined_call_operand.hbm [shape: f32[8,128], index: 7, kind: output, shape index: {}]  }
   0x1   :  { %v333_v0 = vld [vmem:[%s453_s1 + $0x8] sm:$0xff]   ;;  %300 = vmatprep.subr.bf16.mxu0 %v364_v1  ;;  %308 = vmatprep.subr.bf16.mxu1 %v364_v1  ;;  %v334_v2 = vld [vmem:[%s453_s1] sm:$0xff]   ;;  %v335_v3 = vld [vmem:[%s455_s3 + $0x18] sm:$0xff]  }
   0x2   :  { %301 = vmatpush3.bf16.msra.mxu0 %v333_v0  ;;  %304 = vmatprep.mubr.msk.bf16.mxu0 %vm365_vm0, %v364_v1  ;;  %v28_v4 = vld [vmem:[%s452_s0] sm:$0xf]  ;;  %v336_v5 = vld [vmem:[%s455_s3 + $0x10] sm:$0xff]  }
   0x3   :  { %302 = vmatprep.subr.bf16.mxu0 %v364_v1  ;;  %316 = vmatprep.mubr.msk.bf16.mxu1 %vm365_vm0, %v364_v1 }
   0x4   :  { %309 = vmatpush3.bf16.msra.mxu1 %v335_v3 }
   0x5   :  { %310 = vmatprep.subr.bf16.mxu1 %v364_v1 }
   0x6   :  { %303 = vmatpush3.bf16.msra.mxu0 %v334_v2 }
   0x7   :  { %320 = vmatprep.subr.bf16.mxu0 %v364_v1 }
   0x8   :  { %311 = vmatpush3.bf16.msra.mxu1 %v336_v5 }
   0x9   :  { %12 = vsyncpa [#allocation3], 0  ;;  %305 = vmatmul.mubr.msk.bf16.vlgmr.msra.gmra.mxu0 %vm52_vm1, %v28_v4  ;;  %312 = vmatprep.subr.bf16.mxu1 %v364_v1  ;;  %v337_v6 = vld [vmem:[%s455_s3 + $0x8] sm:$0xff]   ;;  %v338_v7 = vld [vmem:[%s455_s3] sm:$0xff]   ;;  %vm137_vm2 = vcmask 523264   ;;  %vm214_vm3 = vcmask 392192  }
   0xa   :  { %326 = vmatprep.mubr.msk.bf16.mxu0 %vm365_vm0, %v364_v1  ;;  %v339_v8 = vld [vmem:[%s457_s5 + $0x10] sm:$0xff]   ;;  %v273_v9 = vld [vmem:[%s454_s2] ss:$0 sm:$0xff]  ;;  %v340_v17 = vld [vmem:[%s457_s5 + $0x8] sm:$0xff]   ;;  %s366_s23 = smov [#allocation2]  }
   0xb   :  { %321 = vmatpush3.bf16.msra.mxu0 %v339_v8  ;;  %v341_v18 = vld [vmem:[%s457_s5] sm:$0xff]   ;;  %s265_s5 = sshll.u32 %s366_s23, 4  ;;  %s266_s5 = int_to_ptr.vmem [resolvable:$true] %s265_s5 }
   0xc   :  { %313 = vmatpush3.bf16.msra.mxu1 %v337_v6  ;;  %322 = vmatprep.subr.bf16.mxu0 %v364_v1  ;;  %v277_v19 = vld [vmem:[%s456_s4] ss:$0 sm:$0xff]  ;;  %s342_s4 = scalar_lea.vmem %s266_s5, 128  ;;  %p347_p1 = scmp.lt.s32.totalorder %s266_s5, %s266_s5 }
   0xd   :  { %314 = vmatprep.subr.bf16.mxu1 %v364_v1  ;;  %v283_v27 = vld [vmem:[%s458_s6] ss:$0 sm:$0xff]  ;;  %p343_p0 = scmp.ne.s32.totalorder %s266_s5, %s342_s4  ;;  %p348_p2 = scmp.lt.s32.totalorder %s342_s4, %s342_s4 }
   0xf   :  { %323 = vmatpush3.bf16.msra.mxu0 %v340_v17  ;;  %p349_p3 = por %p348_p2, %p347_p1 }
  0x10   :  { %315 = vmatpush3.bf16.msra.mxu1 %v338_v7  ;;  %324 = vmatprep.subr.bf16.mxu0 %v364_v1 }
  0x11   :  { %p350_p4 = pnand %p349_p3, %p343_p0 }
  0x13   :  { %325 = vmatpush3.bf16.msra.mxu0 %v341_v18 }
  0xc9   :  { %v90_v10 = vpop.f32.mrf.mxu0 }
  0xca   :  { %v91_v11 = vadd.f32 %v273_v9, %v90_v10 }
  0xcb   :  { %v306_v12 = vpop.f32.mrf.mxu0 }
  0xcc   :  { %v96_v13 = vmax.f32 %v91_v11, 0.0 }
  0xcd   :  { %v93_v14 = vpop.f32.mrf.mxu0 }
  0xce   :  { %v97_v15 = vpack.c.bf16 %v96_v13, %v96_v13 }
  0xcf   :  { %v307_v16 = vpop.f32.mrf.mxu0 }
  0xd0   :  { %317 = vmatmul.mubr.msk.bf16.vlgmr.msra.gmra.mxu1 %vm137_vm2, %v97_v15 }
 0x190   :  { %v175_v20 = vpop.f32.mrf.mxu1 }
 0x191   :  { %v176_v21 = vadd.f32 %v277_v19, %v175_v20 }
 0x192   :  { %v318_v22 = vpop.f32.mrf.mxu1 }
 0x193   :  { %v181_v23 = vmax.f32 %v176_v21, 0.0 }
 0x194   :  { %v178_v24 = vpop.f32.mrf.mxu1 }
 0x195   :  { %v182_v25 = vpack.c.bf16 %v181_v23, %v181_v23 }
 0x196   :  { %v319_v26 = vpop.f32.mrf.mxu1 }
 0x197   :  { %327 = vmatmul.mubr.msk.bf16.vlgmr.msra.gmra.mxu0 %vm214_vm3, %v182_v25 }
 0x257   :  { %v252_v28 = vpop.f32.mrf.mxu0 }
 0x258   :  { %v253_v29 = vadd.f32 %v283_v27, %v252_v28 }
 0x259   :  { %v328_v30 = vpop.f32.mrf.mxu0 }
 0x25a   :  { %258 = vst [vmem:[#allocation2] sm:$0xff] %v253_v29 }
 0x25b   :  { %v255_v31 = vpop.f32.mrf.mxu0 }
 0x25c   :  { %353 = shalt.err (!%p350_p4)
}
 0x25d   :  { %268 = dma.vmem_to_hbm [thread:$0]  %s266_s5, 128, %s459_s7, [#allocation3]   ;;  %v329_v32 = vpop.f32.mrf.mxu0 }
 0x25e   :  { %362 = dma.done.wait [#allocation3], 128  }
 0x25f   :  { %363 = vsyncadd [#allocation3], 4294967168 }
 0x260   :  { %272 = vsyncpa [#allocation3], 1 }

</bundles_post_ra>
